<compile_context>
chip_gen: v7x
topology: tpu7x:2x2x1
jax: 0.10.0
libtpu: 0.0.40
codegen_flags: <defaults>
</compile_context>

<pallas_src>
import jax
import jax.numpy as jnp
from jax.experimental import pallas as pl
from jax.experimental.pallas import tpu as pltpu


_TARGET_BLOCK_BYTES = 4 * 1024 * 1024   # ~4 MiB per block (good v5e/v6e/v7x)
_MIN_PALLAS_BYTES = 1 * 1024 * 1024     # below this, let XLA fuse it
_VMEM_LIMIT_BYTES = 40 * 1024 * 1024    # 4 x 4 MiB resident + headroom, < v7x 64 MiB


def _swish_kernel(x_ref, o_ref):
    x = x_ref[...]
    # f32 math (no-op cast for f32 inputs); kernel is mem-bound so compute is free.
    xf = x.astype(jnp.float32)
    o_ref[...] = (xf * jax.nn.sigmoid(xf)).astype(o_ref.dtype)


def _sublane_multiple(dtype) -> int:
    itemsize = jnp.dtype(dtype).itemsize
    # 8 for 4-byte, 16 for 2-byte, 32 for 1-byte dtypes.
    return max(8, 32 // max(1, itemsize))


def swish(x: jax.Array, *, force_pallas: bool = False, donate: bool = False) -> jax.Array:
    """Elementwise Swish. Any shape/dtype; lane-dense Pallas path for big inputs.

    donate=True aliases the input HBM buffer to the output (only on the no-pad
    path) — use only if the caller no longer needs x.
    """
    if x.size == 0:
        return x

    itemsize = jnp.dtype(x.dtype).itemsize
    nbytes = x.size * itemsize
    if not force_pallas and nbytes < _MIN_PALLAS_BYTES:
        # Tiny input: fixed pallas_call overhead + forced HBM round trip dwarf
        # the work; let XLA fuse it into the producer.
        # TODO(synk): when this follows a Pallas matmul, fuse into its epilogue.
        return x * jax.nn.sigmoid(x)

    orig_shape = x.shape
    flat = x.reshape(-1)
    n = flat.shape[0]

    # Only pad (full-array copy) when n is not a multiple of 128 — rare.
    n_pad = pl.cdiv(n, 128) * 128
    padded = n_pad != n
    if padded:
        flat = jnp.pad(flat, (0, n_pad - n))   # swish(0) == 0; sliced off below

    # Lane-dense width: largest of {1024, 512, 256, 128} that divides n_pad,
    # so the reshape is exact and needs no extra padding.
    lane_w = 128
    for cand in (1024, 512, 256):
        if n_pad % cand == 0:
            lane_w = cand
            break
    rows = n_pad // lane_w

    sub = _sublane_multiple(x.dtype)
    # Rows per block so one block is ~_TARGET_BLOCK_BYTES, rounded to the
    # dtype's sublane tile; ragged last block is masked by Pallas.
    tr = max(sub, (_TARGET_BLOCK_BYTES // (lane_w * itemsize)) // sub * sub)
    tr = min(tr, pl.cdiv(rows, sub) * sub)

    grid = (pl.cdiv(rows, tr),)
    x2 = flat.reshape(rows, lane_w)

    extra = {}
    if donate and not padded:
        extra["input_output_aliases"] = {0: 0}

    out = pl.pallas_call(
        _swish_kernel,
        out_shape=jax.ShapeDtypeStruct((rows, lane_w), x.dtype),
        grid_spec=pltpu.PrefetchScalarGridSpec(
            num_scalar_prefetch=0,
            grid=grid,
            in_specs=[pl.BlockSpec((tr, lane_w), lambda i: (i, 0))],
            out_specs=pl.BlockSpec((tr, lane_w), lambda i: (i, 0)),
        ),
        compiler_params=pltpu.CompilerParams(
            dimension_semantics=("parallel",),   # megacore-shardable on v7x
            vmem_limit_bytes=_VMEM_LIMIT_BYTES,
        ),
        cost_estimate=pl.CostEstimate(
            flops=4 * n, transcendentals=n, bytes_accessed=2 * n * itemsize),
        **extra,
    )(x2)

    out_flat = out.reshape(-1)
    if padded:
        out_flat = out_flat[:n]
    return out_flat.reshape(orig_shape)


if __name__ == "__main__":
    key = jax.random.PRNGKey(0)
    k1, k2, k3, k4 = jax.random.split(key, 4)

    def ref(v):
        vf = v.astype(jnp.float32)
        return (vf * jax.nn.sigmoid(vf)).astype(v.dtype)

    # 1) Tiny shape matching the dynamics-module usage (batch, hidden) ->
    #    plain-JAX fallback path.
    x_small = jax.random.normal(k1, (8, 32), dtype=jnp.float32)
    y_small = jax.block_until_ready(swish(x_small))
    assert jnp.allclose(y_small, ref(x_small), atol=1e-6, rtol=1e-6), \
        "fallback path mismatch vs reference"

    # 2) Same tiny shape forced through the Pallas path (128-multiple count,
    #    no pad; single partial block handled by Pallas masking).
    y_small_p = jax.block_until_ready(swish(x_small, force_pallas=True))
    assert jnp.allclose(y_small_p, ref(x_small), atol=1e-6, rtol=1e-6), \
        "pallas (masked, no-pad) path mismatch vs reference"

    # 3) Non-128-multiple element count forced through Pallas -> exercises the
    #    (rare) pad + unpad fallback.
    x_odd = jax.random.normal(k2, (7, 33), dtype=jnp.float32)
    y_odd = jax.block_until_ready(swish(x_odd, force_pallas=True))
    assert jnp.allclose(y_odd, ref(x_odd), atol=1e-6, rtol=1e-6), \
        "pallas (padded) path mismatch vs reference"

    # 4) Medium shape -> Pallas path with multiple grid steps and a ragged
    #    last row-block (2000 rows, 1024-row blocks), no host-side pad.
    x_med = jax.random.normal(k3, (2000, 1024), dtype=jnp.float32)
    y_med = jax.block_until_ready(swish(x_med))
    assert jnp.allclose(y_med, ref(x_med), atol=1e-6, rtol=1e-6), \
        "pallas (tiled, ragged) path mismatch vs reference"

    # 5) bf16 input (16-row sublane tile) forced through Pallas.
    x_bf = jax.random.normal(k4, (512, 200), dtype=jnp.bfloat16)
    y_bf = jax.block_until_ready(swish(x_bf, force_pallas=True))
    assert jnp.allclose(y_bf.astype(jnp.float32), ref(x_bf).astype(jnp.float32),
                        atol=2e-2, rtol=2e-2), \
        "pallas (bf16) path mismatch vs reference"

    print("KERNEL_OK")
</pallas_src>

<mosaic_0001>
module attributes {stable_mosaic.version = 11 : i64} {
  func.func @_swish_kernel(%arg0: i32, %arg1: memref<8x256xf32, #tpu.memory_space<vmem>>, %arg2: memref<8x256xf32, #tpu.memory_space<vmem>>) attributes {dimension_semantics = [#tpu.dimension_semantics<parallel>], iteration_bounds = array<i64: 1>, scalar_prefetch = 0 : i64, scratch_operands = 0 : i64, tpu.core_type = #tpu.core_type<tc>, window_params = [{transform_indices = @transform_0, window_bounds = array<i64: 8, 256>}, {transform_indices = @transform_1, window_bounds = array<i64: 8, 256>}]} {
    %c0 = arith.constant 0 : index
    %c0_0 = arith.constant 0 : index
    %0 = vector.load %arg1[%c0, %c0_0] : memref<8x256xf32, #tpu.memory_space<vmem>>, vector<8x256xf32>
    %1 = arith.negf %0 : vector<8x256xf32>
    %2 = math.exp %1 : vector<8x256xf32>
    %cst = arith.constant 1.000000e+00 : f32
    %3 = vector.broadcast %cst : f32 to vector<8x256xf32>
    %4 = arith.addf %3, %2 : vector<8x256xf32>
    %5 = arith.divf %3, %4 : vector<8x256xf32>
    %6 = arith.mulf %0, %5 : vector<8x256xf32>
    %c0_1 = arith.constant 0 : index
    %c0_2 = arith.constant 0 : index
    %7 = vector.load %arg2[%c0_1, %c0_2] : memref<8x256xf32, #tpu.memory_space<vmem>>, vector<8x256xf32>
    tpu.vector_store %arg2[%c0_1, %c0_2], %6 {strides = array<i32>} : memref<8x256xf32, #tpu.memory_space<vmem>>, vector<8x256xf32>,
    return
  }
  func.func @transform_0(%arg0: i32) -> (i32, i32) {
    %c0_i32 = arith.constant 0 : i32
    %c0_i32_0 = arith.constant 0 : i32
    return %arg0, %c0_i32 : i32, i32
  }
  func.func @transform_1(%arg0: i32) -> (i32, i32) {
    %c0_i32 = arith.constant 0 : i32
    %c0_i32_0 = arith.constant 0 : i32
    return %arg0, %c0_i32 : i32, i32
  }
}

</mosaic_0001>

<bundles_post_ra>
// kernel: tpu_custom_call.1
= control target key start
LH: loop header
LB: loop body
LE: loop exit
PB: predicated region body
PF: predicated region fallthrough
CT: control target
= control target key end

     0   :  { %6 = vsyncpa [#allocation3], 0  ;;  %s272_s0 = inlined_call_operand.hbm [shape: f32[1,256], index: 0, kind: input, shape index: {}]   ;;  %s273_s1 = inlined_call_operand.hbm [shape: f32[1,256], index: 1, kind: output, shape index: {}]  }
   0x1   :  { %7 = vsyncpa [#allocation4], 0 }
   0x2   :  { %12 = vsyncadd [#allocation3], 224  ;;  %s208_s6 = smov [#allocation2]   ;;  %s160_s10 = scalar_lea.hbm %s272_s0, 32 }
   0x3   :  { %s13_s7 = sshll.u32 %s208_s6, 4  ;;  %p161_p0 = scmp.ne.s32.totalorder %s272_s0, %s160_s10  ;;  %s14_s7 = int_to_ptr.vmem [resolvable:$true] %s13_s7 }
   0x4   :  { %p164_p1 = scmp.lt.u32.totalorder %s160_s10, %s272_s0 }
   0x6   :  { %p166_p2 = pnand %p164_p1, %p161_p0 }
   0x8   :  { %169 = shalt.err (!%p166_p2)
}
   0x9   :  { %s170_s15 = scalar_lea.vmem %s14_s7, 32  ;;  %s174_s16 = scalar_lea.vmem %s14_s7, 256 }
   0xa   :  { %p171_p3 = scmp.ne.s32.totalorder %s14_s7, %s170_s15  ;;  %p175_p4 = scmp.lt.s32.totalorder %s14_s7, %s14_s7 }
   0xb   :  { %p176_p5 = scmp.lt.s32.totalorder %s174_s16, %s170_s15 }
   0xd   :  { %p177_p6 = por %p176_p5, %p175_p4 }
   0xf   :  { %p178_p7 = pnand %p177_p6, %p171_p3 }
  0x11   :  { %181 = shalt.err (!%p178_p7)
}
  0x12   :  { %s209_s17 = smov 32   ;;  %s210_s18 = smov 2  }
  0x13   :  { %19 = dma.hbm_to_vmem [thread:$0]  %s272_s0, 32, %s14_s7, [#allocation3], %s209_s17, %s209_s17, %s210_s18  }
  0x14   :  { %204 = dma.done.wait [#allocation3], 256  }
  0x15   :  { %205 = vsyncadd [#allocation3], 4294967040  ;;  %v23_v0 = vld [vmem:[#allocation2] sm:$0x3]  ;;  %v24_v1 = vld [vmem:[#allocation2 + $0x2] sm:$0x3]  ;;  %v87_v32 = vlaneseq }
  0x16   :  { %v25_v2 = vld [vmem:[#allocation2 + $0x4] sm:$0x3]  ;;  %v116_v3 = vmul.f32 -1.442695, %v23_v0  ;;  %v117_v4 = vmul.f32 -1.442695, %v24_v1 }
  0x17   :  { %v118_v5 = vmul.f32 -1.442695, %v25_v2  ;;  %v26_v6 = vld [vmem:[#allocation2 + $0x6] sm:$0x3]  ;;  %v27_v7 = vld [vmem:[#allocation2 + $0x8] sm:$0x3] }
  0x18   :  { %v28_v8 = vld [vmem:[#allocation2 + $0xa] sm:$0x3]  ;;  %128 = vpow2.f32 %v116_v3  ;;  %v119_v9 = vmul.f32 -1.442695, %v26_v6  ;;  %v120_v10 = vmul.f32 -1.442695, %v27_v7 }
  0x19   :  { %130 = vpow2.f32 %v117_v4  ;;  %v121_v11 = vmul.f32 -1.442695, %v28_v8  ;;  %v29_v12 = vld [vmem:[#allocation2 + $0xc] sm:$0x3]  ;;  %v30_v13 = vld [vmem:[#allocation2 + $0xe] sm:$0x3] }
  0x1a   :  { %132 = vpow2.f32 %v118_v5  ;;  %v122_v14 = vmul.f32 -1.442695, %v29_v12  ;;  %v123_v15 = vmul.f32 -1.442695, %v30_v13  ;;  %vm237_vm0 = vcmp.lt.s32.totalorder %v87_v32, 256 }
  0x1b   :  { %134 = vpow2.f32 %v119_v9 }
  0x1c   :  { %136 = vpow2.f32 %v120_v10 }
  0x1d   :  { %138 = vpow2.f32 %v121_v11 }
  0x1e   :  { %140 = vpow2.f32 %v122_v14 }
  0x1f   :  { %142 = vpow2.f32 %v123_v15 }
  0x22   :  { %v129_v16 = vpop.eup %128 }
  0x23   :  { %v131_v17 = vpop.eup %130  ;;  %v55_v18 = vadd.f32 1.0, %v129_v16 }
  0x24   :  { %v133_v19 = vpop.eup %132  ;;  %v56_v20 = vadd.f32 1.0, %v131_v17 }
  0x25   :  { %v135_v21 = vpop.eup %134  ;;  %144 = vrcp.f32 %v55_v18  ;;  %v57_v22 = vadd.f32 1.0, %v133_v19 }
  0x26   :  { %v137_v23 = vpop.eup %136  ;;  %146 = vrcp.f32 %v56_v20  ;;  %v58_v24 = vadd.f32 1.0, %v135_v21 }
  0x27   :  { %v139_v25 = vpop.eup %138  ;;  %148 = vrcp.f32 %v57_v22  ;;  %v59_v26 = vadd.f32 1.0, %v137_v23 }
  0x28   :  { %v141_v27 = vpop.eup %140  ;;  %150 = vrcp.f32 %v58_v24  ;;  %v60_v28 = vadd.f32 1.0, %v139_v25 }
  0x29   :  { %v143_v29 = vpop.eup %142  ;;  %152 = vrcp.f32 %v59_v26  ;;  %v61_v30 = vadd.f32 1.0, %v141_v27 }
  0x2a   :  { %154 = vrcp.f32 %v60_v28  ;;  %v62_v31 = vadd.f32 1.0, %v143_v29 }
  0x2b   :  { %156 = vrcp.f32 %v61_v30 }
  0x2c   :  { %158 = vrcp.f32 %v62_v31 }
  0x2f   :  { %v145_v33 = vpop.eup %144 }
  0x30   :  { %v147_v35 = vpop.eup %146  ;;  %v79_v36 = vmul.f32 %v145_v33, %v23_v0 }
  0x31   :  { %v149_v37 = vpop.eup %148  ;;  %v80_v38 = vmul.f32 %v147_v35, %v24_v1 }
  0x32   :  { %v151_v39 = vpop.eup %150  ;;  %91 = vst.msk [vmem:[#allocation5] sm:$0x3] %vm237_vm0, %v79_v36  ;;  %v81_v40 = vmul.f32 %v149_v37, %v25_v2 }
  0x33   :  { %v153_v41 = vpop.eup %152  ;;  %92 = vst.msk [vmem:[#allocation5 + $0x2] sm:$0x3] %vm237_vm0, %v80_v38  ;;  %v82_v42 = vmul.f32 %v151_v39, %v26_v6 }
  0x34   :  { %v155_v43 = vpop.eup %154  ;;  %93 = vst.msk [vmem:[#allocation5 + $0x4] sm:$0x3] %vm237_vm0, %v81_v40  ;;  %v83_v44 = vmul.f32 %v153_v41, %v27_v7 }
  0x35   :  { %v157_v45 = vpop.eup %156  ;;  %94 = vst.msk [vmem:[#allocation5 + $0x6] sm:$0x3] %vm237_vm0, %v82_v42  ;;  %v84_v46 = vmul.f32 %v155_v43, %v28_v8 }
  0x36   :  { %v159_v47 = vpop.eup %158  ;;  %95 = vst.msk [vmem:[#allocation5 + $0x8] sm:$0x3] %vm237_vm0, %v83_v44  ;;  %v85_v48 = vmul.f32 %v157_v45, %v29_v12 }
  0x37   :  { %96 = vst.msk [vmem:[#allocation5 + $0xa] sm:$0x3] %vm237_vm0, %v84_v46  ;;  %v86_v49 = vmul.f32 %v159_v47, %v30_v13 }
  0x38   :  { %97 = vst.msk [vmem:[#allocation5 + $0xc] sm:$0x3] %vm237_vm0, %v85_v48 }
  0x39   :  { %98 = vst.msk [vmem:[#allocation5 + $0xe] sm:$0x3] %vm237_vm0, %v86_v49 }
  0x3a   :  { %103 = vsyncadd [#allocation4], 224  ;;  %s211_s0 = smov [#allocation5]  }
  0x3b   :  { %s104_s21 = sshll.u32 %s211_s0, 4  ;;  %s105_s21 = int_to_ptr.vmem [resolvable:$true] %s104_s21 }
  0x3c   :  { %s182_s22 = scalar_lea.vmem %s105_s21, 32  ;;  %s186_s23 = scalar_lea.vmem %s105_s21, 256 }
  0x3d   :  { %p183_p8 = scmp.ne.s32.totalorder %s105_s21, %s182_s22  ;;  %p187_p9 = scmp.lt.s32.totalorder %s105_s21, %s105_s21 }
  0x3e   :  { %p188_p10 = scmp.lt.s32.totalorder %s186_s23, %s182_s22 }
  0x40   :  { %p189_p11 = por %p188_p10, %p187_p9 }
  0x42   :  { %p190_p12 = pnand %p189_p11, %p183_p8 }
  0x44   :  { %193 = shalt.err (!%p190_p12)
}
  0x45   :  { %s194_s26 = scalar_lea.hbm %s273_s1, 32 }
  0x46   :  { %p195_p13 = scmp.ne.s32.totalorder %s273_s1, %s194_s26  ;;  %p198_p0 = scmp.lt.u32.totalorder %s194_s26, %s273_s1 }
  0x48   :  { %p200_p1 = pnand %p198_p0, %p195_p13 }
  0x4a   :  { %203 = shalt.err (!%p200_p1)
}
  0x4b   :  { %110 = dma.vmem_to_hbm [thread:$0]  %s105_s21, 32, %s273_s1, [#allocation4], %s209_s17, %s209_s17, %s210_s18  }
  0x4c   :  { %206 = dma.done.wait [#allocation4], 256  }
  0x4d   :  { %207 = vsyncadd [#allocation4], 4294967040 }
  0x4e   :  { %114 = vsyncpa [#allocation3], 1 }
  0x4f   :  { %115 = vsyncpa [#allocation4], 1 }

</bundles_post_ra>
